<compile_context>
chip_gen: v7x
topology: tpu7x:2x2x1
jax: 0.10.0
libtpu: 0.0.40
codegen_flags: <defaults>
</compile_context>

<pallas_src>
import jax
import jax.numpy as jnp
import numpy as np
from jax import lax
from jax.experimental import pallas as pl
from jax.experimental.pallas import tpu as pltpu


# ----------------------------------------------------------------------------
# Utilities: tile picking, VMEM budgeting, megacore batch split
# ----------------------------------------------------------------------------
def _pick_tile(n, pref, align=8):
    """Largest divisor of n that is <= pref and a multiple of `align`.
    Falls back to the full extent n (always a legal block shape)."""
    pref = max(1, min(pref, n))
    for d in range(pref, 0, -1):
        if n % d == 0 and d % align == 0:
            return d
    return n


def _vmem_cap_bytes():
    try:
        return int(pltpu.get_tpu_info().vmem_capacity_bytes)
    except Exception:
        return 64 * 1024 * 1024            # v7x (smallest) per-core capacity


def _vmem_limit(*bufs):
    """Scoped-VMEM limit derived from actual block sizes: (shape, dtype, copies)."""
    need = 0
    for shape, dtype, copies in bufs:
        need += int(np.prod(shape)) * np.dtype(dtype).itemsize * copies
    need = int(need * 1.25) + (2 << 20)     # headroom for compiler-internal scratch
    lo = 32 * 1024 * 1024
    hi = max(lo, int(0.9 * _vmem_cap_bytes()))
    return max(lo, min(need, hi))


def _default_batch_blocks(B):
    """2 batch blocks on 2-TensorCore chips (v7x) when the per-core batch stays
    sublane aligned; 1 elsewhere (the extra grid axis is pure loop overhead)."""
    try:
        kind = jax.devices()[0].device_kind.lower()
    except Exception:
        return 1
    if ("v7" in kind or "tpu7" in kind) and B % 2 == 0 and (B // 2) % 8 == 0:
        return 2
    return 1


# ----------------------------------------------------------------------------
# Hoisted input-to-hidden gate projection:  (M, K) @ (K, 4H) + (1, 4H)
# ----------------------------------------------------------------------------
def gate_proj_kernel(x_ref, w_ref, b_ref, out_ref):
    # x: (tm, K) bf16   w: (K, 4H) bf16   b: (1, 4H) f32   out: (tm, 4H) f32
    out_ref[...] = (jnp.dot(x_ref[...], w_ref[...],
                            preferred_element_type=jnp.float32) + b_ref[...])


def gate_projection(x_flat, w_fused, b_fused, *, m_chunk=1024):
    # x_flat: (M, K) bf16 ; w_fused: (K, 4H) bf16 ; b_fused: (1, 4H) f32 -> (M, 4H) f32
    M, K = x_flat.shape
    H4 = w_fused.shape[-1]
    tm = _pick_tile(M, m_chunk, align=8)
    vmem = _vmem_limit(((tm, K), jnp.bfloat16, 2), ((K, H4), jnp.bfloat16, 2),
                       ((1, H4), jnp.float32, 2), ((tm, H4), jnp.float32, 2))
    return pl.pallas_call(
        gate_proj_kernel,
        out_shape=jax.ShapeDtypeStruct((M, H4), jnp.float32),
        grid_spec=pltpu.PrefetchScalarGridSpec(
            num_scalar_prefetch=0,
            grid=(M // tm,),
            in_specs=[pl.BlockSpec((tm, K), lambda m: (m, 0)),
                      pl.BlockSpec((K, H4), lambda m: (0, 0)),   # resident, DMA'd once
                      pl.BlockSpec((1, H4), lambda m: (0, 0))],
            out_specs=pl.BlockSpec((tm, H4), lambda m: (m, 0))),
        compiler_params=pltpu.CompilerParams(
            dimension_semantics=("parallel",),
            vmem_limit_bytes=vmem),
    )(x_flat, w_fused, b_fused)


# ----------------------------------------------------------------------------
# Listener recurrence: LSTM with precomputed fused input gates
# ----------------------------------------------------------------------------
def listener_rec_kernel(xg_ref, whh_ref, feat_ref, h_sc, c_sc):
    # xg: (tc, bb, 4H) f32   whh: (H, 4H) bf16   feat: (tc, bb, H) bf16
    @pl.when(pl.program_id(1) == 0)
    def _():
        h_sc[...] = jnp.zeros_like(h_sc)
        c_sc[...] = jnp.zeros_like(c_sc)

    H = h_sc.shape[-1]
    tc = xg_ref.shape[0]

    def step(t, carry):
        # One fused (bb, H) @ (H, 4H) matmul per step; gates sliced on lanes.
        pre = xg_ref[t] + jnp.dot(h_sc[...].astype(jnp.bfloat16), whh_ref[...],
                                  preferred_element_type=jnp.float32)       # (bb, 4H)
        i = jax.nn.sigmoid(pre[:, 0 * H:1 * H])
        f = jax.nn.sigmoid(pre[:, 1 * H:2 * H])
        g = jnp.tanh(pre[:, 2 * H:3 * H])
        o = jax.nn.sigmoid(pre[:, 3 * H:4 * H])
        c_new = f * c_sc[...] + i * g
        h_new = o * jnp.tanh(c_new)
        c_sc[...] = c_new
        h_sc[...] = h_new
        feat_ref[t] = h_new.astype(feat_ref.dtype)                          # bf16 writeback
        return carry

    lax.fori_loop(0, tc, step, 0, unroll=True)


def listener_recurrence(xg, whh_fused, *, time_chunk=16, batch_blocks=1):
    # xg: (T, B, 4H) f32 ; whh_fused: (H, 4H) bf16  ->  feat (T, B, H) bf16
    T, B, H4 = xg.shape
    H = H4 // 4
    tc = _pick_tile(T, time_chunk, align=1)
    bb = B // batch_blocks
    vmem = _vmem_limit(((tc, bb, H4), jnp.float32, 2), ((H, H4), jnp.bfloat16, 2),
                       ((tc, bb, H), jnp.bfloat16, 2), ((bb, H), jnp.float32, 2))
    return pl.pallas_call(
        listener_rec_kernel,
        out_shape=jax.ShapeDtypeStruct((T, B, H), jnp.bfloat16),
        grid_spec=pltpu.PrefetchScalarGridSpec(
            num_scalar_prefetch=0,
            grid=(batch_blocks, T // tc),
            in_specs=[pl.BlockSpec((tc, bb, H4), lambda b, i: (i, b, 0)),
                      pl.BlockSpec((H, H4), lambda b, i: (0, 0))],
            out_specs=pl.BlockSpec((tc, bb, H), lambda b, i: (i, b, 0)),
            scratch_shapes=[pltpu.VMEM((bb, H), jnp.float32),
                            pltpu.VMEM((bb, H), jnp.float32)]),
        compiler_params=pltpu.CompilerParams(
            dimension_semantics=("parallel", "arbitrary"),
            vmem_limit_bytes=vmem),
    )(xg, whh_fused)


# ----------------------------------------------------------------------------
# Speller recurrence: attention LSTM decoder (teacher forced)
# ----------------------------------------------------------------------------
def speller_rec_kernel(eg_ref, feat_ref, kproj_ref, wrec_ref,
                       h_out_ref, ctx_out_ref, h_sc, c_sc, ctx_sc):
    # eg: (lc, bb, 4H) f32   feat/kproj: (bb, T, H) bf16   wrec: (2H, 4H) bf16
    @pl.when(pl.program_id(1) == 0)
    def _():
        h_sc[...] = jnp.zeros_like(h_sc)
        c_sc[...] = jnp.zeros_like(c_sc)
        ctx_sc[...] = jnp.zeros_like(ctx_sc)

    H = h_sc.shape[-1]
    lc = eg_ref.shape[0]

    def step(t, carry):
        # One fused (bb, 2H) @ (2H, 4H) matmul for the whole recurrent part.
        hx = jnp.concatenate([h_sc[...], ctx_sc[...]], axis=-1).astype(jnp.bfloat16)
        pre = eg_ref[t] + jnp.dot(hx, wrec_ref[...],
                                  preferred_element_type=jnp.float32)       # (bb, 4H)
        i = jax.nn.sigmoid(pre[:, 0 * H:1 * H])
        f = jax.nn.sigmoid(pre[:, 1 * H:2 * H])
        g = jnp.tanh(pre[:, 2 * H:3 * H])
        o = jax.nn.sigmoid(pre[:, 3 * H:4 * H])
        c_new = f * c_sc[...] + i * g
        h_new = o * jnp.tanh(c_new)

        # Attention: wq is hoisted into kproj (=feat@wq^T) outside the loop, so
        # each step is just two batched MXU matmuls, lane-dense over T.
        q3 = h_new[:, None, :].astype(jnp.bfloat16)                          # (bb, 1, H)
        s = jnp.einsum("bqd,bkd->bqk", q3, kproj_ref[...],
                       preferred_element_type=jnp.float32)                   # (bb, 1, T)
        m = jnp.max(s, axis=-1, keepdims=True)
        e = jnp.exp(s - m)
        attn = e * pl.reciprocal(jnp.sum(e, axis=-1, keepdims=True), approx=True)
        ctx = jnp.einsum("bqk,bkd->bqd", attn.astype(jnp.bfloat16), feat_ref[...],
                         preferred_element_type=jnp.float32)[:, 0, :]        # (bb, H)

        h_sc[...] = h_new
        c_sc[...] = c_new
        ctx_sc[...] = ctx
        h_out_ref[t] = h_new.astype(h_out_ref.dtype)                         # bf16 writeback
        ctx_out_ref[t] = ctx.astype(ctx_out_ref.dtype)
        return carry

    lax.fori_loop(0, lc, step, 0, unroll=True)


def speller_recurrence(eg, feat_bth, kproj_bth, wrec_fused, *,
                       label_chunk=16, batch_blocks=1):
    # eg: (L, B, 4H) f32 ; feat/kproj: (B, T, H) bf16 ; wrec: (2H, 4H) bf16
    # -> (h_seq, ctx_seq) each (L, B, H) bf16
    L, B, H4 = eg.shape
    H = H4 // 4
    T = feat_bth.shape[1]
    lc = _pick_tile(L, label_chunk, align=1)
    bb = B // batch_blocks
    vmem = _vmem_limit(((lc, bb, H4), jnp.float32, 2),
                       ((bb, T, H), jnp.bfloat16, 4),       # feat + kproj (resident)
                       ((2 * H, H4), jnp.bfloat16, 2),
                       ((lc, bb, H), jnp.bfloat16, 4),      # two bf16 outputs
                       ((bb, H), jnp.float32, 3))
    return pl.pallas_call(
        speller_rec_kernel,
        out_shape=(jax.ShapeDtypeStruct((L, B, H), jnp.bfloat16),
                   jax.ShapeDtypeStruct((L, B, H), jnp.bfloat16)),
        grid_spec=pltpu.PrefetchScalarGridSpec(
            num_scalar_prefetch=0,
            grid=(batch_blocks, L // lc),
            in_specs=[pl.BlockSpec((lc, bb, H4), lambda b, i: (i, b, 0)),
                      pl.BlockSpec((bb, T, H), lambda b, i: (b, 0, 0)),   # resident
                      pl.BlockSpec((bb, T, H), lambda b, i: (b, 0, 0)),   # resident
                      pl.BlockSpec((2 * H, H4), lambda b, i: (0, 0))],
            out_specs=[pl.BlockSpec((lc, bb, H), lambda b, i: (i, b, 0)),
                       pl.BlockSpec((lc, bb, H), lambda b, i: (i, b, 0))],
            scratch_shapes=[pltpu.VMEM((bb, H), jnp.float32),
                            pltpu.VMEM((bb, H), jnp.float32),
                            pltpu.VMEM((bb, H), jnp.float32)]),
        compiler_params=pltpu.CompilerParams(
            dimension_semantics=("parallel", "arbitrary"),
            vmem_limit_bytes=vmem),
    )(eg, feat_bth, kproj_bth, wrec_fused)


# ----------------------------------------------------------------------------
# Vocab projection: logits = h @ Wh + ctx @ Wc + b   (no [h;ctx] concat)
# ----------------------------------------------------------------------------
def out_proj_kernel(h_ref, c_ref, wh_ref, wc_ref, b_ref, o_ref):
    o_ref[...] = (jnp.dot(h_ref[...], wh_ref[...], preferred_element_type=jnp.float32)
                  + jnp.dot(c_ref[...], wc_ref[...], preferred_element_type=jnp.float32)
                  + b_ref[...])


def output_projection(h, ctx, wout_h, wout_c, bout, *, m_chunk=1024, n_chunk=1024):
    # h, ctx: (M, H) bf16 ; wout_h/wout_c: (H, V) bf16 ; bout: (1, V) f32 -> (M, V) f32
    M, H = h.shape
    V = wout_h.shape[-1]
    tm = _pick_tile(M, m_chunk, align=8)
    tn = _pick_tile(V, n_chunk, align=128)
    vmem = _vmem_limit(((tm, H), jnp.bfloat16, 4), ((H, tn), jnp.bfloat16, 4),
                       ((1, tn), jnp.float32, 2), ((tm, tn), jnp.float32, 2))
    return pl.pallas_call(
        out_proj_kernel,
        out_shape=jax.ShapeDtypeStruct((M, V), jnp.float32),
        grid_spec=pltpu.PrefetchScalarGridSpec(
            num_scalar_prefetch=0,
            grid=(M // tm, V // tn),
            in_specs=[pl.BlockSpec((tm, H), lambda m, n: (m, 0)),
                      pl.BlockSpec((tm, H), lambda m, n: (m, 0)),
                      pl.BlockSpec((H, tn), lambda m, n: (0, n)),
                      pl.BlockSpec((H, tn), lambda m, n: (0, n)),
                      pl.BlockSpec((1, tn), lambda m, n: (0, n))],
            out_specs=pl.BlockSpec((tm, tn), lambda m, n: (m, n))),
        compiler_params=pltpu.CompilerParams(
            dimension_semantics=("parallel", "parallel"),
            vmem_limit_bytes=vmem),
    )(h, ctx, wout_h, wout_c, bout)


# ----------------------------------------------------------------------------
# LAS wrapper (mirrors LAS.forward)
# ----------------------------------------------------------------------------
def las_forward(inputs, ground_truth, params,
                teacher_forcing_rate=0.9, use_beam=False, beam_size=16,
                time_chunk=16, label_chunk=16, batch_blocks=None):
    # inputs: (B, T, Din)   ground_truth: (B, L) int32 token ids
    # TODO(synk): teacher_forcing_rate / use_beam / beam_size unused (always teacher forced).
    del teacher_forcing_rate, use_beam, beam_size
    B, T, Din = inputs.shape
    H = params["enc_whh"].shape[-1]
    L = ground_truth.shape[1]
    bf16 = jnp.bfloat16

    if batch_blocks is None:
        batch_blocks = _default_batch_blocks(B)
    if B % batch_blocks != 0 or (batch_blocks > 1 and (B // batch_blocks) % 8 != 0):
        batch_blocks = 1   # batch split only when per-core batch stays sublane-aligned

    # Fuse per-gate weights once (tiny): (4, K, H) -> (K, 4H), (4, 1, H) -> (1, 4H).
    def fuse_w(w):
        return jnp.transpose(w, (1, 0, 2)).reshape(w.shape[1], 4 * H)

    def fuse_b(b):
        return jnp.transpose(b, (1, 0, 2)).reshape(1, 4 * H)

    enc_wih_f = fuse_w(params["enc_wih"]).astype(bf16)
    enc_whh_f = fuse_w(params["enc_whh"]).astype(bf16)
    enc_b_f = fuse_b(params["enc_b"]).astype(jnp.float32)
    dec_wih_e_f = fuse_w(params["wih_e"]).astype(bf16)
    dec_b_f = fuse_b(params["b"]).astype(jnp.float32)
    # rows 0:H multiply h, rows H:2H multiply ctx  -> single (2H, 4H) recurrent weight
    dec_wrec_f = jnp.concatenate([fuse_w(params["whh"]),
                                  fuse_w(params["wih_c"])], axis=0).astype(bf16)

    # --- Listener: hoisted fused input projection, then the serial recurrence.
    # Time-major rows so the (T*B, 4H) projection reshapes for free to (T, B, 4H).
    x_flat = jnp.transpose(inputs, (1, 0, 2)).reshape(T * B, Din).astype(bf16)
    xg = gate_projection(x_flat, enc_wih_f, enc_b_f).reshape(T, B, 4 * H)
    feat_tbh = listener_recurrence(xg, enc_whh_f, time_chunk=time_chunk,
                                   batch_blocks=batch_blocks)              # (T, B, H) bf16
    feat_bth = jnp.transpose(feat_tbh, (1, 0, 2))                          # (B, T, H) bf16

    # Hoisted query/key projection: one big matmul instead of one per decode step.
    kproj_bth = jnp.einsum("bth,dh->btd", feat_bth.astype(jnp.float32),
                           params["wq"].astype(jnp.float32)).astype(bf16)  # (B, T, H)

    # --- Speller: hoisted embedding projection, then the attention recurrence.
    emb = params["embed"][ground_truth.T]                                  # (L, B, E) gather
    e_flat = emb.reshape(L * B, -1).astype(bf16)
    eg = gate_projection(e_flat, dec_wih_e_f, dec_b_f).reshape(L, B, 4 * H)
    h_seq, ctx_seq = speller_recurrence(eg, feat_bth, kproj_bth, dec_wrec_f,
                                        label_chunk=label_chunk,
                                        batch_blocks=batch_blocks)         # (L,B,H) bf16 x2

    # --- Vocab projection (tiled, lane-dense V; h and ctx consumed separately).
    logits = output_projection(h_seq.reshape(L * B, H), ctx_seq.reshape(L * B, H),
                               params["wout_h"].astype(bf16),
                               params["wout_c"].astype(bf16),
                               params["bout"])
    return jnp.transpose(logits.reshape(L, B, -1), (1, 0, 2))              # (B, L, V)


# ----------------------------------------------------------------------------
# Pure-JAX reference (f32 math on the same bf16-stored weights)
# ----------------------------------------------------------------------------
def las_reference(inputs, ground_truth, params):
    f32 = jnp.float32
    B, T, Din = inputs.shape
    H = params["enc_whh"].shape[-1]
    L = ground_truth.shape[1]

    def cell(x_parts, h, c, whh, b):
        pre = []
        for g in range(4):
            acc = b[g].astype(f32)
            for x, w in x_parts:
                acc = acc + jnp.dot(x.astype(f32), w[g].astype(f32))
            acc = acc + jnp.dot(h, whh[g].astype(f32))
            pre.append(acc)
        i = jax.nn.sigmoid(pre[0]); f = jax.nn.sigmoid(pre[1])
        g_ = jnp.tanh(pre[2]); o = jax.nn.sigmoid(pre[3])
        c_new = f * c + i * g_
        h_new = o * jnp.tanh(c_new)
        return h_new, c_new

    h = jnp.zeros((B, H), f32); c = jnp.zeros((B, H), f32)
    feats = []
    for t in range(T):
        h, c = cell([(inputs[:, t, :], params["enc_wih"])], h, c,
                    params["enc_whh"], params["enc_b"])
        feats.append(h)
    feat = jnp.stack(feats, axis=1)                              # (B, T, H)

    emb = params["embed"][ground_truth].astype(f32)              # (B, L, E)
    h = jnp.zeros((B, H), f32); c = jnp.zeros((B, H), f32); ctx = jnp.zeros((B, H), f32)
    logits = []
    for t in range(L):
        h, c = cell([(emb[:, t, :], params["wih_e"]), (ctx, params["wih_c"])],
                    h, c, params["whh"], params["b"])
        q = jnp.dot(h, params["wq"].astype(f32))                 # (B, H)
        scores = jnp.einsum("bh,bth->bt", q, feat)               # (B, T)
        attn = jax.nn.softmax(scores, axis=-1)
        ctx = jnp.einsum("bt,bth->bh", attn, feat)               # (B, H)
        logits.append(jnp.dot(h, params["wout_h"].astype(f32))
                      + jnp.dot(ctx, params["wout_c"].astype(f32))
                      + params["bout"])
    return jnp.stack(logits, axis=1)                             # (B, L, V)


# ----------------------------------------------------------------------------
# Deterministic parameter init (per-gate weight layout, bf16 matmul weights)
# ----------------------------------------------------------------------------
def init_params(key, Din, H, E, V):
    bf16 = jnp.bfloat16

    def uni(k, shape, fan_in, dtype=jnp.float32):
        s = 1.0 / np.sqrt(fan_in)
        return jax.random.uniform(k, shape, jnp.float32, -s, s).astype(dtype)

    ks = jax.random.split(key, 12)
    return {
        "enc_wih": uni(ks[0], (4, Din, H), Din, bf16),
        "enc_whh": uni(ks[1], (4, H, H), H, bf16),
        "enc_b":   uni(ks[2], (4, 1, H), H),
        "embed":   uni(ks[3], (V, E), E),
        "wih_e":   uni(ks[4], (4, E, H), E + H, bf16),
        "wih_c":   uni(ks[5], (4, H, H), E + H, bf16),
        "whh":     uni(ks[6], (4, H, H), H, bf16),
        "b":       uni(ks[7], (4, 1, H), H),
        "wq":      uni(ks[8], (H, H), H, bf16),
        "wout_h":  uni(ks[9], (H, V), 2 * H, bf16),
        "wout_c":  uni(ks[10], (H, V), 2 * H, bf16),
        "bout":    uni(ks[11], (1, V), 2 * H),
    }


if __name__ == "__main__":
    B, T, Din, H, E, V, L = 2, 8, 32, 32, 32, 32, 8
    key = jax.random.PRNGKey(0)
    k_x, k_gt, k_p = jax.random.split(key, 3)
    inputs = jax.random.normal(k_x, (B, T, Din), jnp.float32)
    ground_truth = jax.random.randint(k_gt, (B, L), 0, V, jnp.int32)
    params = init_params(k_p, Din, H, E, V)

    logits = las_forward(inputs, ground_truth, params,
                         teacher_forcing_rate=0.9, use_beam=False, beam_size=16,
                         time_chunk=16, label_chunk=16)
    logits = jax.block_until_ready(logits)

    ref = las_reference(inputs, ground_truth, params)
    assert logits.shape == (B, L, V)
    np.testing.assert_allclose(np.asarray(logits), np.asarray(ref), atol=3e-2, rtol=3e-2)
    print("KERNEL_OK")
</pallas_src>

<mosaic_0001>
module attributes {stable_mosaic.version = 11 : i64} {
  func.func @gate_proj_kernel(%arg0: i32, %arg1: memref<16x32xbf16, #tpu.memory_space<vmem>>, %arg2: memref<32x128xbf16, #tpu.memory_space<vmem>>, %arg3: memref<1x128xf32, #tpu.memory_space<vmem>>, %arg4: memref<16x128xf32, #tpu.memory_space<vmem>>) attributes {dimension_semantics = [#tpu.dimension_semantics<parallel>], iteration_bounds = array<i64: 1>, scalar_prefetch = 0 : i64, scratch_operands = 0 : i64, tpu.core_type = #tpu.core_type<tc>, window_params = [{transform_indices = @transform_0, window_bounds = array<i64: 16, 32>}, {pipeline_mode = #tpu.pipeline_mode<synchronous>, transform_indices = @transform_1, window_bounds = array<i64: 32, 128>}, {pipeline_mode = #tpu.pipeline_mode<synchronous>, transform_indices = @transform_2, window_bounds = array<i64: 1, 128>}, {transform_indices = @transform_3, window_bounds = array<i64: 16, 128>}]} {
    %c0 = arith.constant 0 : index
    %c0_0 = arith.constant 0 : index
    %0 = vector.load %arg1[%c0, %c0_0] : memref<16x32xbf16, #tpu.memory_space<vmem>>, vector<16x32xbf16>
    %c0_1 = arith.constant 0 : index
    %c0_2 = arith.constant 0 : index
    %1 = vector.load %arg2[%c0_1, %c0_2] : memref<32x128xbf16, #tpu.memory_space<vmem>>, vector<32x128xbf16>
    %cst = arith.constant dense<0.000000e+00> : vector<16x128xf32>
    %2 = tpu.matmul %0, %1, %cst {dimension_numbers = #tpu.dot_dimension_numbers<[1], [0], [0], [1], [0, 0, 1, 1], [], []>} : vector<16x32xbf16>, vector<32x128xbf16>, vector<16x128xf32> -> vector<16x128xf32>
    %c0_3 = arith.constant 0 : index
    %c0_4 = arith.constant 0 : index
    %3 = vector.load %arg3[%c0_3, %c0_4] : memref<1x128xf32, #tpu.memory_space<vmem>>, vector<1x128xf32>
    %4 = vector.broadcast %3 : vector<1x128xf32> to vector<16x128xf32>
    %5 = arith.addf %2, %4 : vector<16x128xf32>
    %c0_5 = arith.constant 0 : index
    %c0_6 = arith.constant 0 : index
    %6 = vector.load %arg4[%c0_5, %c0_6] : memref<16x128xf32, #tpu.memory_space<vmem>>, vector<16x128xf32>
    tpu.vector_store %arg4[%c0_5, %c0_6], %5 {strides = array<i32>} : memref<16x128xf32, #tpu.memory_space<vmem>>, vector<16x128xf32>,
    return
  }
  func.func @transform_0(%arg0: i32) -> (i32, i32) {
    %c0_i32 = arith.constant 0 : i32
    %c0_i32_0 = arith.constant 0 : i32
    return %arg0, %c0_i32 : i32, i32
  }
  func.func @transform_1(%arg0: i32) -> (i32, i32) {
    %c0_i32 = arith.constant 0 : i32
    %c0_i32_0 = arith.constant 0 : i32
    %c0_i32_1 = arith.constant 0 : i32
    return %c0_i32, %c0_i32_0 : i32, i32
  }
  func.func @transform_2(%arg0: i32) -> (i32, i32) {
    %c0_i32 = arith.constant 0 : i32
    %c0_i32_0 = arith.constant 0 : i32
    %c0_i32_1 = arith.constant 0 : i32
    return %c0_i32, %c0_i32_0 : i32, i32
  }
  func.func @transform_3(%arg0: i32) -> (i32, i32) {
    %c0_i32 = arith.constant 0 : i32
    %c0_i32_0 = arith.constant 0 : i32
    return %arg0, %c0_i32 : i32, i32
  }
}

</mosaic_0001>

<bundles_post_ra>
// kernel: tpu_custom_call.1
= control target key start
LH: loop header
LB: loop body
LE: loop exit
PB: predicated region body
PF: predicated region fallthrough
CT: control target
= control target key end

     0   :  { %8 = vsyncpa [#allocation3], 0  ;;  %s307_s0 = inlined_call_operand.hbm [shape: bf16[16,32], index: 0, kind: input, shape index: {}]   ;;  %s308_s1 = inlined_call_operand.hbm [shape: bf16[32,128], index: 1, kind: input, shape index: {}]   ;;  %s309_s2 = inlined_call_operand.vmem [shape: f32[1,128], index: 2, kind: input, shape index: {}]   ;;  %s310_s3 = inlined_call_operand.hbm [shape: f32[16,128], index: 3, kind: output, shape index: {}]  }
   0x1   :  { %9 = vsyncpa [#allocation6], 0 }
   0x2   :  { %10 = vsyncpa [#allocation4], 0  ;;  %s239_s12 = smov [#allocation2]   ;;  %s167_s16 = scalar_lea.hbm %s307_s0, 128 }
   0x3   :  { %s16_s13 = sshll.u32 %s239_s12, 4  ;;  %p168_p0 = scmp.ne.s32.totalorder %s307_s0, %s167_s16  ;;  %s17_s13 = int_to_ptr.vmem [resolvable:$true] %s16_s13 }
   0x4   :  { %p171_p1 = scmp.lt.u32.totalorder %s167_s16, %s307_s0 }
   0x6   :  { %p173_p2 = pnand %p171_p1, %p168_p0 }
   0x8   :  { %176 = shalt.err (!%p173_p2)
}
   0x9   :  { %s177_s21 = scalar_lea.vmem %s17_s13, 128  ;;  %p182_p4 = scmp.lt.s32.totalorder %s17_s13, %s17_s13 }
   0xa   :  { %p178_p3 = scmp.ne.s32.totalorder %s17_s13, %s177_s21  ;;  %p183_p5 = scmp.lt.s32.totalorder %s177_s21, %s177_s21 }
   0xc   :  { %p184_p6 = por %p183_p5, %p182_p4 }
   0xe   :  { %p185_p7 = pnand %p184_p6, %p178_p3 }
  0x10   :  { %188 = shalt.err (!%p185_p7)
}
  0x11   :  { %s240_s22 = smov 64   ;;  %s241_s23 = smov 4  }
  0x12   :  { %22 = dma.hbm_to_vmem [thread:$0]  %s307_s0, 128, %s17_s13, [#allocation3], %s240_s22, %s240_s22, %s241_s23  }
  0x13   :  { %s242_s26 = smov [#allocation5]   ;;  %s189_s30 = scalar_lea.hbm %s308_s1, 256 }
  0x14   :  { %s28_s27 = sshll.u32 %s242_s26, 4  ;;  %p190_p8 = scmp.ne.s32.totalorder %s308_s1, %s189_s30  ;;  %s29_s27 = int_to_ptr.vmem [resolvable:$true] %s28_s27 }
  0x15   :  { %p193_p9 = scmp.lt.u32.totalorder %s189_s30, %s308_s1 }
  0x17   :  { %p195_p10 = pnand %p193_p9, %p190_p8 }
  0x19   :  { %198 = shalt.err (!%p195_p10)
}
  0x1a   :  { %s199_s8 = scalar_lea.vmem %s29_s27, 256  ;;  %p204_p12 = scmp.lt.s32.totalorder %s29_s27, %s29_s27 }
  0x1b   :  { %p200_p11 = scmp.ne.s32.totalorder %s29_s27, %s199_s8  ;;  %p205_p13 = scmp.lt.s32.totalorder %s199_s8, %s199_s8 }
  0x1d   :  { %p206_p0 = por %p205_p13, %p204_p12 }
  0x1f   :  { %p207_p1 = pnand %p206_p0, %p200_p11 }
  0x21   :  { %210 = shalt.err (!%p207_p1)
}
  0x22   :  { %34 = dma.hbm_to_vmem [thread:$0]  %s308_s1, 256, %s29_s27, [#allocation6], %s240_s22, %s240_s22, %s241_s23  }
  0x23   :  { %233 = dma.done.wait [#allocation3], 128  }
  0x24   :  { %234 = vsyncadd [#allocation3], 4294967168 }
  0x25   :  { %235 = dma.done.wait [#allocation6], 256  }
  0x26   :  { %236 = vsyncadd [#allocation6], 4294967040  ;;  %v243_v0 = vmov 0.0   ;;  %vm244_vm0 = vmmov 0   ;;  %v164_v1 = vld [vmem:[#allocation5] sm:$0xff]   ;;  %v165_v2 = vld [vmem:[#allocation5 + $0x8] sm:$0xff]  }
  0x27   :  { %147 = vmatprep.subr.bf16.mxu0 %v243_v0  ;;  %151 = vmatprep.mubr.msk.bf16.mxu0 %vm244_vm0, %v243_v0  ;;  %v166_v3 = vld [vmem:[#allocation2] sm:$0xff]   ;;  %vm74_vm1 = vcmask 261120   ;;  %s245_s1 = smov [#allocation7]  }
  0x28   :  { %148 = vmatpush3.bf16.msra.mxu0 %v164_v1  ;;  %v139_v4 = vld [vmem:[%s309_s2] ss:$0 sm:$0xff]  ;;  %s126_s12 = sshll.u32 %s245_s1, 4  ;;  %s127_s12 = int_to_ptr.vmem [resolvable:$true] %s126_s12 }
  0x29   :  { %149 = vmatprep.subr.bf16.mxu0 %v243_v0  ;;  %s211_s13 = scalar_lea.vmem %s127_s12, 256  ;;  %p216_p3 = scmp.lt.s32.totalorder %s127_s12, %s127_s12 }
  0x2a   :  { %p212_p2 = scmp.ne.s32.totalorder %s127_s12, %s211_s13  ;;  %p217_p4 = scmp.lt.s32.totalorder %s211_s13, %s211_s13 }
  0x2c   :  { %150 = vmatpush3.bf16.msra.mxu0 %v165_v2  ;;  %p218_p5 = por %p217_p4, %p216_p3 }
  0x2e   :  { %p219_p6 = pnand %p218_p5, %p212_p2 }
  0x2f   :  { %152 = vmatmul.mubr.msk.bf16.vlgmr.msra.gmra.mrb[0].mxu0 %vm74_vm1, %v166_v3 }
 0x102   :  { %v112_v5 = vpop.f32.mrb[0].mxu0 }
 0x103   :  { %v113_v6 = vadd.f32 %v139_v4, %v112_v5  ;;  %v153_v7 = vpop.f32.mrb[1].mxu0 }
 0x104   :  { %v115_v8 = vpop.f32.mrb[2].mxu0 }
 0x105   :  { %119 = vst [vmem:[#allocation7] sm:$0xff] %v113_v6  ;;  %v116_v9 = vadd.f32 %v139_v4, %v115_v8  ;;  %v154_v10 = vpop.f32.mrb[3].mxu0 }
 0x107   :  { %120 = vst [vmem:[#allocation7 + $0x8] sm:$0xff] %v116_v9 }
 0x108   :  { %222 = shalt.err (!%p219_p6)
}
 0x109   :  { %s223_s15 = scalar_lea.hbm %s310_s3, 256 }
 0x10a   :  { %p224_p7 = scmp.ne.s32.totalorder %s310_s3, %s223_s15  ;;  %p227_p8 = scmp.lt.u32.totalorder %s223_s15, %s310_s3 }
 0x10c   :  { %p229_p9 = pnand %p227_p8, %p224_p7 }
 0x10e   :  { %232 = shalt.err (!%p229_p9)
}
 0x10f   :  { %s246_s20 = smov 128   ;;  %s247_s21 = smov 8  }
 0x110   :  { %132 = dma.vmem_to_hbm [thread:$0]  %s127_s12, 256, %s310_s3, [#allocation4], %s246_s20, %s246_s20, %s247_s21  }
 0x111   :  { %237 = dma.done.wait [#allocation4], 256  }
 0x112   :  { %238 = vsyncadd [#allocation4], 4294967040 }
 0x113   :  { %136 = vsyncpa [#allocation3], 1 }
 0x114   :  { %137 = vsyncpa [#allocation6], 1 }
 0x115   :  { %138 = vsyncpa [#allocation4], 1 }

</bundles_post_ra>
